<compile_context>
chip_gen: v6e
topology: v6e:2x2x1
jax: 0.10.0
libtpu: 0.0.40
codegen_flags: <defaults>
</compile_context>

<pallas_src>
import functools

import jax
import jax.numpy as jnp
from jax import lax
from jax.experimental import pallas as pl
from jax.experimental.pallas import tpu as pltpu

LANE = 128
SUBLANE = 8


def _charbonnier_sum_kernel(*refs, eps, num_rows, tile_rows, steps_per_core,
                            mask_kind):
    """Accumulates per-(sublane,lane) partial sums of sqrt((x-y)^2+eps)[*mask]."""
    if mask_kind is None:
        x_ref, y_ref, out_ref = refs
        m_ref = None
    else:
        x_ref, y_ref, m_ref, out_ref = refs

    c = pl.program_id(0)   # core-split axis ("parallel")
    i = pl.program_id(1)   # reduction axis ("arbitrary")

    @pl.when(i == 0)
    def _():
        out_ref[...] = jnp.zeros_like(out_ref)

    block_id = c * steps_per_core + i
    row0 = block_id * tile_rows           # row-granularity: no int32 overflow

    def accumulate(mask_tail_rows):
        d = x_ref[...].astype(jnp.float32) - y_ref[...].astype(jnp.float32)
        val = jnp.sqrt(d * d + jnp.float32(eps))
        if mask_kind == "bool":
            # int8 0/1 mask: where avoids an upconvert + multiply.
            val = jnp.where(m_ref[...] != 0, val, jnp.float32(0.0))
        elif mask_kind == "float":
            val = val * m_ref[...].astype(jnp.float32)
        if mask_tail_rows:
            # Only the tail block (and fully out-of-range clamped steps) pays
            # for this.  where (not multiply) so garbage rows (possibly NaN)
            # can never poison the sum.
            rows = lax.broadcasted_iota(jnp.int32, (tile_rows, LANE), 0)
            val = jnp.where(rows < (num_rows - row0), val, jnp.float32(0.0))
        # (tile_rows,128) -> (8,128) per-sublane/lane partials: cheap VPU adds
        # under the HBM bottleneck; the cross-lane reduce happens once outside.
        out_ref[...] += val.reshape(tile_rows // SUBLANE, SUBLANE, LANE).sum(axis=0)

    fully_valid = row0 + tile_rows <= num_rows

    @pl.when(fully_valid)
    def _():
        accumulate(False)            # fast path: no iota / compare / select

    @pl.when(jnp.logical_not(fully_valid))
    def _():
        accumulate(True)             # tail path: row-granularity masking


def _default_num_cores():
    # 2 TensorCores per chip only on v7x; v5e/v6e are single-TC, where a 2-way
    # split would just be a serial loop with a wasted clamped step.
    try:
        kind = jax.devices()[0].device_kind.lower()
    except Exception:
        return 1
    return 2 if "v7" in kind else 1


def charbonnier_loss(x, y, mask=None, eps=1e-6, mode=None, tile_rows=4096,
                     num_cores=None):
    """Matches CharbonnierLoss.forward:
         loss = sqrt((x-y)^2 + eps) [* mask]
         mode == 'sum' -> sum(loss) / C   (C = x.shape[1])
         else          -> mean(loss)      (mean over ALL elements)
    """
    N = x.shape[1]
    numel = x.size
    eps = float(eps)

    xf = x.reshape(-1)
    yf = y.reshape(-1)

    mask_kind = None
    mf = None
    scalar_mask = None
    if mask is not None:
        m = mask
        if m.size == 1:
            # A scalar mask just scales the summed loss; never streamed.
            scalar_mask = m.reshape(()).astype(jnp.float32)
        else:
            if m.shape != x.shape:
                # TODO(synk): broadcast small (per-channel / per-batch) masks
                # inside the kernel instead of materializing a full-size copy.
                m = jnp.broadcast_to(m, x.shape)
            if m.dtype == jnp.bool_:
                mask_kind = "bool"
                m = m.astype(jnp.int8)   # 1 B/elem mask stream
            else:
                mask_kind = "float"
            mf = m.reshape(-1)

    # Main part = largest prefix whose (rows of 128) count is a multiple of 8;
    # the tiny remainder (< 1024 elements) is summed in plain JAX below so no
    # full-array pad and no per-step validity machinery for aligned work.
    M = (numel // (SUBLANE * LANE)) * SUBLANE     # rows, multiple of 8
    main = M * LANE

    total = jnp.float32(0.0)
    if M > 0:
        if main == numel:
            x2 = xf.reshape(M, LANE)
            y2 = yf.reshape(M, LANE)
            m2 = mf.reshape(M, LANE) if mf is not None else None
        else:
            # Rare path (numel not a multiple of 1024).  XLA may materialize
            # the prefix slice, but the kernel itself stays mask-free except
            # for its last block.
            x2 = xf[:main].reshape(M, LANE)
            y2 = yf[:main].reshape(M, LANE)
            m2 = mf[:main].reshape(M, LANE) if mf is not None else None

        # Block rows: multiple of 32 (satisfies int8 mask tiling too), capped
        # at M (block == full array dims for small inputs).
        tr = max(32, (int(tile_rows) // 32) * 32)
        tr = min(tr, M)
        num_blocks = pl.cdiv(M, tr)

        cores = num_cores if num_cores is not None else _default_num_cores()
        cores = max(1, min(int(cores), num_blocks))
        steps = pl.cdiv(num_blocks, cores)

        def in_map(c, i):
            # Clamp over-provisioned steps; their contribution is zeroed by
            # the in-kernel row mask (tail path).
            return (jnp.minimum(c * steps + i, num_blocks - 1), 0)

        in_specs = [pl.BlockSpec((tr, LANE), in_map),
                    pl.BlockSpec((tr, LANE), in_map)]
        operands = [x2, y2]
        if m2 is not None:
            in_specs.append(pl.BlockSpec((tr, LANE), in_map))
            operands.append(m2)
        out_spec = pl.BlockSpec((SUBLANE, LANE), lambda c, i: (c, 0))

        # Explicit scoped-VMEM limit so large double-buffered blocks are
        # granted on every generation (v5e default is only 16 MiB).
        in_block_bytes = tr * LANE * (x2.dtype.itemsize + y2.dtype.itemsize +
                                      (m2.dtype.itemsize if m2 is not None else 0))
        vmem_limit = int(min(max(2 * in_block_bytes + (4 << 20), 16 << 20),
                             56 << 20))

        kernel = functools.partial(
            _charbonnier_sum_kernel, eps=eps, num_rows=M, tile_rows=tr,
            steps_per_core=steps, mask_kind=mask_kind)

        partials = pl.pallas_call(
            kernel,
            out_shape=jax.ShapeDtypeStruct((cores * SUBLANE, LANE), jnp.float32),
            grid=(cores, steps),
            in_specs=in_specs,
            out_specs=out_spec,
            compiler_params=pltpu.CompilerParams(
                # TODO(synk): verify on v7x that "parallel" shards the leading
                # axis across the 2 TCs; if not, switch to pltpu.CORE_PARALLEL.
                dimension_semantics=("parallel", "arbitrary"),
                vmem_limit_bytes=vmem_limit),
        )(*operands)
        total = jnp.sum(partials)   # tiny (<= 2048 elem) final cross-lane reduce

    # Remainder (< 1024 elements) in plain JAX.
    if main < numel:
        xt = xf[main:].astype(jnp.float32)
        yt = yf[main:].astype(jnp.float32)
        d = xt - yt
        v = jnp.sqrt(d * d + jnp.float32(eps))
        if mf is not None:
            mt = mf[main:]
            if mask_kind == "bool":
                v = jnp.where(mt != 0, v, jnp.float32(0.0))
            else:
                v = v * mt.astype(jnp.float32)
        total = total + jnp.sum(v)

    if scalar_mask is not None:
        total = total * scalar_mask

    if mode == "sum":
        return total / jnp.float32(N)
    return total / jnp.float32(numel)


if __name__ == "__main__":
    key = jax.random.PRNGKey(0)
    kx, ky, km = jax.random.split(key, 3)

    eps = 1e-6

    # Pure-JAX reference (same semantics as the PyTorch module)
    def ref(x, y, mask=None, mode=None):
        diff = x - y
        loss = jnp.sqrt(diff * diff + eps)
        if mask is not None:
            loss = loss * mask.astype(loss.dtype)
        if mode == "sum":
            return jnp.sum(loss) / x.shape[1]
        return jnp.mean(loss)

    # Small NCHW shapes: batch=2, channels=4, spatial=16x16
    x = jax.random.normal(kx, (2, 4, 16, 16), dtype=jnp.float32)
    y = jax.random.normal(ky, (2, 4, 16, 16), dtype=jnp.float32)
    mask_f = (jax.random.uniform(km, (2, 4, 16, 16)) > 0.5).astype(jnp.float32)
    mask_b = jax.random.uniform(km, (2, 4, 16, 16)) > 0.5   # bool -> int8 stream

    # mode=None (mean), no mask -> 2-stream fast-path kernel
    out_mean = jax.block_until_ready(charbonnier_loss(x, y, eps=eps, mode=None))
    assert jnp.allclose(out_mean, ref(x, y), rtol=1e-5, atol=1e-6)

    # mode='sum', float mask -> 3-stream kernel (float-multiply mask)
    out_sum = jax.block_until_ready(
        charbonnier_loss(x, y, mask=mask_f, eps=eps, mode="sum"))
    assert jnp.allclose(out_sum, ref(x, y, mask_f, "sum"), rtol=1e-5, atol=1e-5)

    # Boolean mask -> int8 stream + where
    out_bool = jax.block_until_ready(
        charbonnier_loss(x, y, mask=mask_b, eps=eps, mode=None))
    assert jnp.allclose(out_bool, ref(x, y, mask_b), rtol=1e-5, atol=1e-6)

    # Multi-block path with odd block count: exercises the (possibly 2-core)
    # split, the clamped out-of-range step and the fast/tail pl.when split.
    xb = jax.random.normal(kx, (2, 3, 128, 128), dtype=jnp.float32)
    yb = jax.random.normal(ky, (2, 3, 128, 128), dtype=jnp.float32)
    out_big = jax.block_until_ready(
        charbonnier_loss(xb, yb, eps=eps, mode=None, tile_rows=256))
    assert jnp.allclose(out_big, ref(xb, yb), rtol=1e-5, atol=1e-6)

    # Non-1024-aligned numel: kernel on the aligned prefix + plain-JAX tail.
    xo = jax.random.normal(kx, (2, 4, 15, 15), dtype=jnp.float32)
    yo = jax.random.normal(ky, (2, 4, 15, 15), dtype=jnp.float32)
    out_odd = jax.block_until_ready(charbonnier_loss(xo, yo, eps=eps, mode=None))
    assert jnp.allclose(out_odd, ref(xo, yo), rtol=1e-5, atol=1e-6)

    print("KERNEL_OK")
</pallas_src>

<mosaic_0001>
module attributes {stable_mosaic.version = 11 : i64} {
  func.func @_charbonnier_sum_kernel(%arg0: i32, %arg1: i32, %arg2: memref<16x128xf32, #tpu.memory_space<vmem>>, %arg3: memref<16x128xf32, #tpu.memory_space<vmem>>, %arg4: memref<8x128xf32, #tpu.memory_space<vmem>>) attributes {dimension_semantics = [#tpu.dimension_semantics<parallel>, #tpu.dimension_semantics<arbitrary>], iteration_bounds = array<i64: 1, 1>, scalar_prefetch = 0 : i64, scratch_operands = 0 : i64, tpu.core_type = #tpu.core_type<tc>, window_params = [{transform_indices = @transform_0, window_bounds = array<i64: 16, 128>}, {transform_indices = @transform_1, window_bounds = array<i64: 16, 128>}, {transform_indices = @transform_2, window_bounds = array<i64: 8, 128>}]} {
    %c0_i32 = arith.constant 0 : i32
    %0 = arith.cmpi eq, %arg1, %c0_i32 : i32
    %1 = arith.extui %0 : i1 to i32
    %c0_i32_0 = arith.constant 0 : i32
    %2 = arith.cmpi ne, %1, %c0_i32_0 : i32
    scf.if %2 {
      %cst = arith.constant 0.000000e+00 : f32
      %13 = vector.broadcast %cst : f32 to vector<8x128xf32>
      %c0 = arith.constant 0 : index
      %c0_5 = arith.constant 0 : index
      %14 = vector.load %arg4[%c0, %c0_5] : memref<8x128xf32, #tpu.memory_space<vmem>>, vector<8x128xf32>
      tpu.vector_store %arg4[%c0, %c0_5], %13 {strides = array<i32>} : memref<8x128xf32, #tpu.memory_space<vmem>>, vector<8x128xf32>,
    } else {
    }
    %c1_i32 = arith.constant 1 : i32
    %3 = arith.muli %arg0, %c1_i32 : i32
    %4 = arith.addi %3, %arg1 : i32
    %c16_i32 = arith.constant 16 : i32
    %5 = arith.muli %4, %c16_i32 : i32
    %c16_i32_1 = arith.constant 16 : i32
    %6 = arith.addi %5, %c16_i32_1 : i32
    %c16_i32_2 = arith.constant 16 : i32
    %7 = arith.cmpi sle, %6, %c16_i32_2 : i32
    %8 = arith.extui %7 : i1 to i32
    %c0_i32_3 = arith.constant 0 : i32
    %9 = arith.cmpi ne, %8, %c0_i32_3 : i32
    scf.if %9 {
      %c0 = arith.constant 0 : index
      %c0_5 = arith.constant 0 : index
      %13 = vector.load %arg2[%c0, %c0_5] : memref<16x128xf32, #tpu.memory_space<vmem>>, vector<16x128xf32>
      %c0_6 = arith.constant 0 : index
      %c0_7 = arith.constant 0 : index
      %14 = vector.load %arg3[%c0_6, %c0_7] : memref<16x128xf32, #tpu.memory_space<vmem>>, vector<16x128xf32>
      %15 = arith.subf %13, %14 : vector<16x128xf32>
      %16 = arith.mulf %15, %15 : vector<16x128xf32>
      %cst = arith.constant 9.99999997E-7 : f32
      %17 = vector.broadcast %cst : f32 to vector<16x128xf32>
      %18 = arith.addf %16, %17 : vector<16x128xf32>
      %19 = math.sqrt %18 : vector<16x128xf32>
      %c0_8 = arith.constant 0 : index
      %c0_9 = arith.constant 0 : index
      %20 = vector.load %arg4[%c0_8, %c0_9] : memref<8x128xf32, #tpu.memory_space<vmem>>, vector<8x128xf32>
      %21 = vector.shape_cast %19 : vector<16x128xf32> to vector<2x8x128xf32>
      %cst_10 = arith.constant dense<0.000000e+00> : vector<8x128xf32>
      %22 = vector.multi_reduction <add>, %21, %cst_10 [0] : vector<2x8x128xf32> to vector<8x128xf32>
      %23 = arith.addf %20, %22 : vector<8x128xf32>
      %c0_11 = arith.constant 0 : index
      %c0_12 = arith.constant 0 : index
      %24 = vector.load %arg4[%c0_11, %c0_12] : memref<8x128xf32, #tpu.memory_space<vmem>>, vector<8x128xf32>
      tpu.vector_store %arg4[%c0_11, %c0_12], %23 {strides = array<i32>} : memref<8x128xf32, #tpu.memory_space<vmem>>, vector<8x128xf32>,
    } else {
    }
    %true = arith.constant true
    %10 = arith.xori %7, %true : i1
    %11 = arith.extui %10 : i1 to i32
    %c0_i32_4 = arith.constant 0 : i32
    %12 = arith.cmpi ne, %11, %c0_i32_4 : i32
    scf.if %12 {
      %c0 = arith.constant 0 : index
      %c0_5 = arith.constant 0 : index
      %13 = vector.load %arg2[%c0, %c0_5] : memref<16x128xf32, #tpu.memory_space<vmem>>, vector<16x128xf32>
      %c0_6 = arith.constant 0 : index
      %c0_7 = arith.constant 0 : index
      %14 = vector.load %arg3[%c0_6, %c0_7] : memref<16x128xf32, #tpu.memory_space<vmem>>, vector<16x128xf32>
      %15 = arith.subf %13, %14 : vector<16x128xf32>
      %16 = arith.mulf %15, %15 : vector<16x128xf32>
      %cst = arith.constant 9.99999997E-7 : f32
      %17 = vector.broadcast %cst : f32 to vector<16x128xf32>
      %18 = arith.addf %16, %17 : vector<16x128xf32>
      %19 = math.sqrt %18 : vector<16x128xf32>
      %20 = tpu.iota {dimensions = array<i32: 0>} : vector<16x128xi32>
      %c16_i32_8 = arith.constant 16 : i32
      %21 = arith.subi %c16_i32_8, %5 : i32
      %22 = vector.broadcast %21 : i32 to vector<16x128xi32>
      %23 = arith.cmpi slt, %20, %22 : vector<16x128xi32>
      %cst_9 = arith.constant 0.000000e+00 : f32
      %24 = vector.broadcast %cst_9 : f32 to vector<16x128xf32>
      %25 = arith.select %23, %19, %24 : vector<16x128xi1>, vector<16x128xf32>
      %c0_10 = arith.constant 0 : index
      %c0_11 = arith.constant 0 : index
      %26 = vector.load %arg4[%c0_10, %c0_11] : memref<8x128xf32, #tpu.memory_space<vmem>>, vector<8x128xf32>
      %27 = vector.shape_cast %25 : vector<16x128xf32> to vector<2x8x128xf32>
      %cst_12 = arith.constant dense<0.000000e+00> : vector<8x128xf32>
      %28 = vector.multi_reduction <add>, %27, %cst_12 [0] : vector<2x8x128xf32> to vector<8x128xf32>
      %29 = arith.addf %26, %28 : vector<8x128xf32>
      %c0_13 = arith.constant 0 : index
      %c0_14 = arith.constant 0 : index
      %30 = vector.load %arg4[%c0_13, %c0_14] : memref<8x128xf32, #tpu.memory_space<vmem>>, vector<8x128xf32>
      tpu.vector_store %arg4[%c0_13, %c0_14], %29 {strides = array<i32>} : memref<8x128xf32, #tpu.memory_space<vmem>>, vector<8x128xf32>,
    } else {
    }
    return
  }
  func.func @transform_0(%arg0: i32, %arg1: i32) -> (i32, i32) {
    %c1_i32 = arith.constant 1 : i32
    %0 = arith.muli %arg0, %c1_i32 : i32
    %1 = arith.addi %0, %arg1 : i32
    %c0_i32 = arith.constant 0 : i32
    %2 = arith.minsi %1, %c0_i32 : i32
    %c0_i32_0 = arith.constant 0 : i32
    %c0_i32_1 = arith.constant 0 : i32
    return %2, %c0_i32_0 : i32, i32
  }
  func.func @transform_1(%arg0: i32, %arg1: i32) -> (i32, i32) {
    %c1_i32 = arith.constant 1 : i32
    %0 = arith.muli %arg0, %c1_i32 : i32
    %1 = arith.addi %0, %arg1 : i32
    %c0_i32 = arith.constant 0 : i32
    %2 = arith.minsi %1, %c0_i32 : i32
    %c0_i32_0 = arith.constant 0 : i32
    %c0_i32_1 = arith.constant 0 : i32
    return %2, %c0_i32_0 : i32, i32
  }
  func.func @transform_2(%arg0: i32, %arg1: i32) -> (i32, i32) {
    %c0_i32 = arith.constant 0 : i32
    %c0_i32_0 = arith.constant 0 : i32
    return %arg0, %c0_i32 : i32, i32
  }
}

</mosaic_0001>

<bundles_post_ra>
// kernel: tpu_custom_call.1
= control target key start
LH: loop header
LB: loop body
LE: loop exit
PB: predicated region body
PF: predicated region fallthrough
CT: control target
= control target key end

     0   :  { %7 = vsyncpa [#allocation3], 0  ;;  %s266_s0 = inlined_call_operand.hbm [shape: f32[16,128], index: 0, kind: input, shape index: {}]   ;;  %s267_s1 = inlined_call_operand.hbm [shape: f32[16,128], index: 1, kind: input, shape index: {}]   ;;  %s268_s2 = inlined_call_operand.hbm [shape: f32[8,128], index: 2, kind: output, shape index: {}]  }
   0x1   :  { %8 = vsyncpa [#allocation6], 0 }
   0x2   :  { %9 = vsyncpa [#allocation4], 0  ;;  %s237_s9 = smov [#allocation2]  }
   0x3   :  { %s21_s10 = sshll.u32 %s237_s9, 4  ;;  %s22_s10 = int_to_ptr.vmem [resolvable:$true] %s21_s10 }
   0x4   :  { %s179_s11 = scalar_lea.vmem %s22_s10, 256  ;;  %p184_p1 = scmp.lt.s32.totalorder %s22_s10, %s22_s10 }
   0x5   :  { %p180_p0 = scmp.ne.s32.totalorder %s22_s10, %s179_s11  ;;  %p185_p2 = scmp.lt.s32.totalorder %s179_s11, %s179_s11 }
   0x7   :  { %p186_p3 = por %p185_p2, %p184_p1 }
   0x9   :  { %p187_p4 = pnand %p186_p3, %p180_p0 }
   0xb   :  { %190 = shalt.err (!%p187_p4)
}
   0xc   :  { %s238_s12 = smov 128   ;;  %s239_s13 = smov 8  }
   0xd   :  { %27 = dma.hbm_to_vmem [thread:$0]  %s266_s0, 256, %s22_s10, [#allocation3], %s238_s12, %s238_s12, %s239_s13  }
   0xe   :  { %s240_s16 = smov [#allocation5]  }
   0xf   :  { %s39_s17 = sshll.u32 %s240_s16, 4  ;;  %s40_s17 = int_to_ptr.vmem [resolvable:$true] %s39_s17 }
  0x10   :  { %s199_s18 = scalar_lea.vmem %s40_s17, 256  ;;  %p204_p6 = scmp.lt.s32.totalorder %s40_s17, %s40_s17 }
  0x11   :  { %p200_p5 = scmp.ne.s32.totalorder %s40_s17, %s199_s18  ;;  %p205_p7 = scmp.lt.s32.totalorder %s199_s18, %s199_s18 }
  0x13   :  { %p206_p8 = por %p205_p7, %p204_p6 }
  0x15   :  { %p207_p9 = pnand %p206_p8, %p200_p5 }
  0x17   :  { %210 = shalt.err (!%p207_p9)
}
  0x18   :  { %45 = dma.hbm_to_vmem [thread:$0]  %s267_s1, 256, %s40_s17, [#allocation6], %s238_s12, %s238_s12, %s239_s13  }
  0x19   :  { %231 = dma.done.wait [#allocation3], 256  }
  0x1a   :  { %232 = vsyncadd [#allocation3], 4294967040 }
  0x1b   :  { %233 = dma.done.wait [#allocation6], 256  }
  0x1c   :  { %234 = vsyncadd [#allocation6], 4294967040  ;;  %v72_v0 = vld [vmem:[#allocation2] sm:$0xff]  ;;  %v73_v1 = vld [vmem:[#allocation2 + $0x8] sm:$0xff]  ;;  %s241_s0 = smov [#allocation7]  }
  0x1d   :  { %v74_v2 = vld [vmem:[#allocation5] sm:$0xff]  ;;  %v75_v3 = vld [vmem:[#allocation5 + $0x8] sm:$0xff]  ;;  %s147_s1 = sshll.u32 %s241_s0, 4  ;;  %s148_s1 = int_to_ptr.vmem [resolvable:$true] %s147_s1 }
  0x1e   :  { %v76_v4 = vsub.f32 %v72_v0, %v74_v2  ;;  %v77_v5 = vsub.f32 %v73_v1, %v75_v3  ;;  %s211_s21 = scalar_lea.vmem %s148_s1, 128  ;;  %p216_p11 = scmp.lt.s32.totalorder %s148_s1, %s148_s1 }
  0x1f   :  { %p212_p10 = scmp.ne.s32.totalorder %s148_s1, %s211_s21  ;;  %p217_p12 = scmp.lt.s32.totalorder %s211_s21, %s211_s21 }
  0x20   :  { %v78_v6 = vmul.f32 %v76_v4, %v76_v4  ;;  %v79_v7 = vmul.f32 %v77_v5, %v77_v5 }
  0x21   :  { %p218_p13 = por %p217_p12, %p216_p11 }
  0x22   :  { %v80_v8 = vadd.f32 1e-06, %v78_v6  ;;  %v81_v9 = vadd.f32 1e-06, %v79_v7 }
  0x23   :  { %p219_p0 = pnand %p218_p13, %p212_p10 }
  0x24   :  { %167 = vrsqrt.f32 %v80_v8  ;;  %vm84_vm0 = vcmp.eq.f32.partialorder %v80_v8, inf  ;;  %v87_v11 = vand.u32 2147483648, %v80_v8  ;;  %vm86_vm1 = vcmp.eq.f32.partialorder %v80_v8, 0.0 }
  0x25   :  { %169 = vrsqrt.f32 %v81_v9  ;;  %vm91_vm2 = vcmp.eq.f32.partialorder %v81_v9, inf  ;;  %v94_v14 = vand.u32 2147483648, %v81_v9  ;;  %vm93_vm3 = vcmp.eq.f32.partialorder %v81_v9, 0.0 }
  0x31   :  { %v168_v10 = vpop.eup %167 }
  0x32   :  { %v170_v12 = vpop.eup %169  ;;  %v83_v13 = vmul.f32 %v168_v10, %v80_v8 }
  0x33   :  { %v90_v15 = vmul.f32 %v170_v12, %v81_v9 }
  0x34   :  { %v85_v16 = vsel %vm84_vm0, %v80_v8, %v83_v13 }
  0x35   :  { %v88_v17 = vsel %vm86_vm1, %v87_v11, %v85_v16  ;;  %v92_v18 = vsel %vm91_vm2, %v81_v9, %v90_v15 }
  0x36   :  { %v95_v19 = vsel %vm93_vm3, %v94_v14, %v92_v18 }
  0x37   :  { %v97_v20 = vadd.f32 %v95_v19, %v88_v17 }
  0x39   :  { %99 = vst [vmem:[#allocation7] sm:$0xff] %v97_v20 }
  0x3a   :  { %222 = shalt.err (!%p219_p0)
}
  0x3b   :  { %150 = dma.vmem_to_hbm [thread:$0]  %s148_s1, 128, %s268_s2, [#allocation4]  }
  0x3c   :  { %235 = dma.done.wait [#allocation4], 128  }
  0x3d   :  { %236 = vsyncadd [#allocation4], 4294967168 }
  0x3e   :  { %154 = vsyncpa [#allocation3], 1 }
  0x3f   :  { %155 = vsyncpa [#allocation6], 1 }
  0x40   :  { %156 = vsyncpa [#allocation4], 1 }

</bundles_post_ra>
